<compile_context>
chip_gen: v5e
topology: v5e:2x2
jax: 0.10.0
libtpu: 0.0.40
codegen_flags: <defaults>
</compile_context>

<pallas_src>
import functools

import jax
import jax.numpy as jnp
from jax import lax
from jax.experimental import pallas as pl
from jax.experimental.pallas import tpu as pltpu

_LANES = 128
_MAX_BLOCK_ROWS = 1024   # 1024 * 128 * 4 B = 512 KiB per f32 input tile
_NUM_CORES = 2           # leading "parallel" grid axis (v7x dual-TC; harmless on 1-TC)


def _cdiv(a, b):
    return -(-a // b)


def _rot_sum_body(rows, block_rows, acc_rows, blocks_per_core,
                  p_ref, g_ref, m_ref, out_ref):
    """Accumulate sum of (1 - cos(p - g)) [* mask] into the resident out block."""
    c = pl.program_id(0)   # core slice ("parallel")
    i = pl.program_id(1)   # row-block within this core's slice ("arbitrary")

    @pl.when(i == 0)
    def _():
        out_ref[...] = jnp.zeros_like(out_ref)

    p = p_ref[...].astype(jnp.float32)
    g = g_ref[...].astype(jnp.float32)
    term = 1.0 - jnp.cos(p - g)
    if m_ref is not None:
        term = term * m_ref[...].astype(jnp.float32)

    # Mask rows past the real slab: covers the partial last block (grid
    # over-coverage, garbage in the padded DMA region) and the clamped re-read
    # of the last block when the 2-way core split over-covers.
    base_row = (c * blocks_per_core + i) * block_rows
    row_ids = lax.broadcasted_iota(jnp.int32, (block_rows, _LANES), 0)
    term = jnp.where(base_row + row_ids < rows, term, 0.0)

    # Fold (block_rows, 128) -> (acc_rows, 128) with pure VALU adds: the
    # reshape splits the sublane axis exactly along native (8, 128) tiles.
    if block_rows != acc_rows:
        term = term.reshape(block_rows // acc_rows, acc_rows, _LANES).sum(axis=0)
    out_ref[...] += term[None]


def _rot_kernel(rows, block_rows, acc_rows, bpc, p_ref, g_ref, out_ref):
    _rot_sum_body(rows, block_rows, acc_rows, bpc, p_ref, g_ref, None, out_ref)


def _rot_masked_kernel(rows, block_rows, acc_rows, bpc, p_ref, g_ref, m_ref, out_ref):
    _rot_sum_body(rows, block_rows, acc_rows, bpc, p_ref, g_ref, m_ref, out_ref)


def rotation_loss(pred_angles, gt_angles, valid_mask=None, *, angle_wire_dtype=None):
    """pred_angles, gt_angles: (B, N, 1); valid_mask: optional (B, N) bool.

    angle_wire_dtype: optionally jnp.bfloat16 to halve input HBM bytes on
    bandwidth-bound chips (v5e); kernel always computes in f32.
    """
    B, N, _ = pred_angles.shape
    total = B * N

    # ---- Lane-dense (rows, 128) view of the flattened angles. ----
    rem = total % _LANES
    pad = 0 if rem == 0 else _LANES - rem
    rows = (total + pad) // _LANES

    def slab(x, dtype):
        x = x.reshape(-1)                       # bitcast, free
        if dtype is not None and x.dtype != dtype:
            x = x.astype(dtype)
        if pad:
            # TODO(synk): the unaligned tail forces one full pad copy; a manual
            # DMA (memory_space=pl.ANY) bulk + tiny-tail path would remove it.
            x = jnp.pad(x, (0, pad))
        return x.reshape(rows, _LANES)          # bitcast when pad == 0

    p_slab = slab(pred_angles, angle_wire_dtype)
    g_slab = slab(gt_angles, angle_wire_dtype)

    # ---- Tiling: multiples of 32 keep the int8 mask block legal; tiny slabs
    # use a full-extent block (always legal). ----
    if rows >= 32:
        block_rows = min(_MAX_BLOCK_ROWS, (rows // 32) * 32)
    else:
        block_rows = rows
    acc_rows = 8 if block_rows % 8 == 0 else block_rows

    total_blocks = _cdiv(rows, block_rows)
    bpc = _cdiv(total_blocks, _NUM_CORES)       # row-blocks per core
    grid = (_NUM_CORES, bpc)

    def in_map(c, i):
        # Clamp to a valid block (no OOB DMA); the kernel masks the duplicate
        # / over-covered rows via the unclamped index, so nothing double-counts.
        return (jnp.minimum(c * bpc + i, total_blocks - 1), 0)

    use_mask = valid_mask is not None
    operands = [p_slab, g_slab]
    in_specs = [pl.BlockSpec((block_rows, _LANES), in_map),
                pl.BlockSpec((block_rows, _LANES), in_map)]
    if use_mask:
        operands.append(slab(valid_mask, jnp.int8))      # 1 B/elem on the wire
        in_specs.append(pl.BlockSpec((block_rows, _LANES), in_map))
        kernel = functools.partial(_rot_masked_kernel, rows, block_rows,
                                   acc_rows, bpc)
    else:
        kernel = functools.partial(_rot_kernel, rows, block_rows, acc_rows, bpc)

    out_shape = jax.ShapeDtypeStruct((_NUM_CORES, acc_rows, _LANES), jnp.float32)
    out_spec = pl.BlockSpec((1, acc_rows, _LANES), lambda c, i: (c, 0, 0))

    bytes_in = int(sum(x.size * x.dtype.itemsize for x in operands))
    cost = pl.CostEstimate(
        flops=4 * total,
        transcendentals=total,
        bytes_accessed=bytes_in + _NUM_CORES * acc_rows * _LANES * 4,
    )

    partials = pl.pallas_call(
        kernel,
        grid=grid,
        in_specs=in_specs,
        out_specs=out_spec,
        out_shape=out_shape,
        compiler_params=pltpu.CompilerParams(
            dimension_semantics=("parallel", "arbitrary"),
            vmem_limit_bytes=32 * 1024 * 1024,
        ),
        cost_estimate=cost,
    )(*operands)

    loss_sum = jnp.sum(partials)
    if use_mask:
        # Cheap XLA reduce over 1 B/elem; replaces the in-kernel count stream.
        # NOTE: an all-False mask yields NaN (0/0), matching torch
        # loss[mask].mean() on an empty selection.
        denom = jnp.sum(valid_mask.astype(jnp.float32))
    else:
        denom = jnp.float32(total)
    return loss_sum / denom


def _reference(pred_angles, gt_angles, valid_mask=None):
    loss = 1.0 - jnp.cos(pred_angles - gt_angles)
    if valid_mask is None:
        return jnp.mean(loss)
    m = valid_mask.astype(jnp.float32)[..., None]
    return jnp.sum(loss * m) / jnp.sum(m)


if __name__ == "__main__":
    key = jax.random.PRNGKey(0)
    k1, k2, k3, k4, k5, k6 = jax.random.split(key, 6)

    # Small shapes consistent with the module interface (B, N, 1).
    B, N = 2, 8
    pred = jax.random.uniform(k1, (B, N, 1), jnp.float32, -3.14, 3.14)
    gt = jax.random.uniform(k2, (B, N, 1), jnp.float32, -3.14, 3.14)
    mask = jax.random.bernoulli(k3, 0.7, (B, N))
    mask = mask.at[0, 0].set(True)  # guarantee at least one valid entry

    out_nomask = jax.block_until_ready(rotation_loss(pred, gt))
    ref_nomask = _reference(pred, gt)
    assert jnp.allclose(out_nomask, ref_nomask, atol=1e-5, rtol=1e-5), (
        out_nomask, ref_nomask)

    out_mask = jax.block_until_ready(rotation_loss(pred, gt, mask))
    ref_mask = _reference(pred, gt, mask)
    assert jnp.allclose(out_mask, ref_mask, atol=1e-5, rtol=1e-5), (
        out_mask, ref_mask)

    # Larger shape: exercises the aligned zero-copy path, multi-block grid,
    # per-core accumulators and the partial last block.
    B2, N2 = 4, 100000
    pred2 = jax.random.uniform(k4, (B2, N2, 1), jnp.float32, -3.14, 3.14)
    gt2 = jax.random.uniform(k5, (B2, N2, 1), jnp.float32, -3.14, 3.14)
    mask2 = jax.random.bernoulli(k6, 0.5, (B2, N2))
    mask2 = mask2.at[0, 0].set(True)

    out2 = jax.block_until_ready(rotation_loss(pred2, gt2, mask2))
    ref2 = _reference(pred2, gt2, mask2)
    assert jnp.allclose(out2, ref2, atol=1e-4, rtol=1e-4), (out2, ref2)

    out3 = jax.block_until_ready(rotation_loss(pred2, gt2))
    ref3 = _reference(pred2, gt2)
    assert jnp.allclose(out3, ref3, atol=1e-4, rtol=1e-4), (out3, ref3)

    print("KERNEL_OK")
</pallas_src>

<mosaic_0001>
module attributes {stable_mosaic.version = 11 : i64} {
  func.func @_rot_kernel(%arg0: i32, %arg1: i32, %arg2: memref<1x128xf32, #tpu.memory_space<vmem>>, %arg3: memref<1x128xf32, #tpu.memory_space<vmem>>, %arg4: memref<1x1x128xf32, #tpu.memory_space<vmem>>) attributes {dimension_semantics = [#tpu.dimension_semantics<parallel>, #tpu.dimension_semantics<arbitrary>], iteration_bounds = array<i64: 2, 1>, scalar_prefetch = 0 : i64, scratch_operands = 0 : i64, tpu.core_type = #tpu.core_type<tc>, window_params = [{transform_indices = @transform_0, window_bounds = array<i64: 1, 128>}, {transform_indices = @transform_1, window_bounds = array<i64: 1, 128>}, {transform_indices = @transform_2, window_bounds = array<i64: 1, 1, 128>}]} {
    %c0_i32 = arith.constant 0 : i32
    %0 = arith.cmpi eq, %arg1, %c0_i32 : i32
    %1 = arith.extui %0 : i1 to i32
    %c0_i32_0 = arith.constant 0 : i32
    %2 = arith.cmpi ne, %1, %c0_i32_0 : i32
    scf.if %2 {
      %cst_13 = arith.constant 0.000000e+00 : f32
      %23 = vector.broadcast %cst_13 : f32 to vector<1x1x128xf32>
      %c0_14 = arith.constant 0 : index
      %c0_15 = arith.constant 0 : index
      %c0_16 = arith.constant 0 : index
      %24 = vector.load %arg4[%c0_14, %c0_15, %c0_16] : memref<1x1x128xf32, #tpu.memory_space<vmem>>, vector<1x1x128xf32>
      tpu.vector_store %arg4[%c0_14, %c0_15, %c0_16], %23 {strides = array<i32>} : memref<1x1x128xf32, #tpu.memory_space<vmem>>, vector<1x1x128xf32>,
    } else {
    }
    %c0 = arith.constant 0 : index
    %c0_1 = arith.constant 0 : index
    %3 = vector.load %arg2[%c0, %c0_1] : memref<1x128xf32, #tpu.memory_space<vmem>>, vector<1x128xf32>
    %c0_2 = arith.constant 0 : index
    %c0_3 = arith.constant 0 : index
    %4 = vector.load %arg3[%c0_2, %c0_3] : memref<1x128xf32, #tpu.memory_space<vmem>>, vector<1x128xf32>
    %5 = arith.subf %3, %4 : vector<1x128xf32>
    %6 = math.cos %5 : vector<1x128xf32>
    %cst = arith.constant 1.000000e+00 : f32
    %7 = vector.broadcast %cst : f32 to vector<1x128xf32>
    %8 = arith.subf %7, %6 : vector<1x128xf32>
    %c1_i32 = arith.constant 1 : i32
    %9 = arith.muli %arg0, %c1_i32 : i32
    %10 = arith.addi %9, %arg1 : i32
    %c1_i32_4 = arith.constant 1 : i32
    %11 = arith.muli %10, %c1_i32_4 : i32
    %12 = tpu.iota {dimensions = array<i32: 0>} : vector<1x128xi32>
    %13 = vector.broadcast %11 : i32 to vector<1x128xi32>
    %14 = arith.addi %13, %12 : vector<1x128xi32>
    %c1_i32_5 = arith.constant 1 : i32
    %15 = vector.broadcast %c1_i32_5 : i32 to vector<1x128xi32>
    %16 = arith.cmpi slt, %14, %15 : vector<1x128xi32>
    %cst_6 = arith.constant 0.000000e+00 : f32
    %17 = vector.broadcast %cst_6 : f32 to vector<1x128xf32>
    %18 = arith.select %16, %8, %17 : vector<1x128xi1>, vector<1x128xf32>
    %c0_7 = arith.constant 0 : index
    %c0_8 = arith.constant 0 : index
    %c0_9 = arith.constant 0 : index
    %19 = vector.load %arg4[%c0_7, %c0_8, %c0_9] : memref<1x1x128xf32, #tpu.memory_space<vmem>>, vector<1x1x128xf32>
    %20 = vector.shape_cast %18 : vector<1x128xf32> to vector<1x1x128xf32>
    %21 = arith.addf %19, %20 : vector<1x1x128xf32>
    %c0_10 = arith.constant 0 : index
    %c0_11 = arith.constant 0 : index
    %c0_12 = arith.constant 0 : index
    %22 = vector.load %arg4[%c0_10, %c0_11, %c0_12] : memref<1x1x128xf32, #tpu.memory_space<vmem>>, vector<1x1x128xf32>
    tpu.vector_store %arg4[%c0_10, %c0_11, %c0_12], %21 {strides = array<i32>} : memref<1x1x128xf32, #tpu.memory_space<vmem>>, vector<1x1x128xf32>,
    return
  }
  func.func @transform_0(%arg0: i32, %arg1: i32) -> (i32, i32) {
    %c1_i32 = arith.constant 1 : i32
    %0 = arith.muli %arg0, %c1_i32 : i32
    %1 = arith.addi %0, %arg1 : i32
    %c0_i32 = arith.constant 0 : i32
    %2 = arith.minsi %1, %c0_i32 : i32
    %c0_i32_0 = arith.constant 0 : i32
    %c0_i32_1 = arith.constant 0 : i32
    return %2, %c0_i32_0 : i32, i32
  }
  func.func @transform_1(%arg0: i32, %arg1: i32) -> (i32, i32) {
    %c1_i32 = arith.constant 1 : i32
    %0 = arith.muli %arg0, %c1_i32 : i32
    %1 = arith.addi %0, %arg1 : i32
    %c0_i32 = arith.constant 0 : i32
    %2 = arith.minsi %1, %c0_i32 : i32
    %c0_i32_0 = arith.constant 0 : i32
    %c0_i32_1 = arith.constant 0 : i32
    return %2, %c0_i32_0 : i32, i32
  }
  func.func @transform_2(%arg0: i32, %arg1: i32) -> (i32, i32, i32) {
    %c0_i32 = arith.constant 0 : i32
    %c0_i32_0 = arith.constant 0 : i32
    %c0_i32_1 = arith.constant 0 : i32
    return %arg0, %c0_i32, %c0_i32_0 : i32, i32, i32
  }
}

</mosaic_0001>

<bundles_post_ra>
// kernel: tpu_custom_call.1
= control target key start
LH: loop header
LB: loop body
LE: loop exit
PB: predicated region body
PF: predicated region fallthrough
CT: control target
= control target key end

     0   :  { %7 = vsyncpa [#allocation3], 0  ;;  %s1038_s0 = inlined_call_operand.hbm [shape: f32[1,128], index: 0, kind: input, shape index: {}]   ;;  %s1039_s1 = inlined_call_operand.hbm [shape: f32[1,128], index: 1, kind: input, shape index: {}]   ;;  %s1040_s2 = inlined_call_operand.hbm [shape: f32[2,1,128], index: 2, kind: output, shape index: {}]  }
   0x1   :  { %9 = vsyncpa [#allocation3 + $0x1], 0 }
   0x2   :  { %10 = vsyncpa [#allocation6], 0 }
   0x3   :  { %12 = vsyncpa [#allocation6 + $0x1], 0 }
   0x4   :  { %13 = vsyncpa [#allocation4], 0 }
   0x5   :  { %15 = vsyncpa [#allocation4 + $0x1], 0  ;;  %s805_s9 = smov 0   ;;  %s807_s10 = smov 0  }
   0x6   :  { %s809_s11 = smov 0   ;;  %s811_s12 = smov 0  }
   0x7   :  { %s813_s13 = smov 0   ;;  %s815_s14 = smov 0  }
   0x8   :  { %s817_s15 = smov 0   ;;  %s819_s16 = smov 0  }
   0x9 LB: > { %s502_s17 = sadd.s32 4294967295, %s778_s16   ;;  %s503_s18 = sadd.s32 4294967294, %s778_s16   ;;  %s778_s16 = sphi %s819_s16, %s21_s16   ;;  %s774_s15 = sphi %s817_s15, %s1054_s15   ;;  %s770_s14 = sphi %s815_s14, %s1053_s14   ;;  %s766_s13 = sphi %s813_s13, %s1028_s13   ;;  %s762_s12 = sphi %s811_s12, %s1052_s12   ;;  %s758_s11 = sphi %s809_s11, %s1051_s11   ;;  %s754_s10 = sphi %s807_s10, %s1050_s10   ;;  %s750_s9 = sphi %s805_s9, %s1049_s9  }
   0xa   : > { %s33_s19 = sadd.s32 1, %s774_s15  ;;  %p747_p1 = scmp.ne.s32.totalorder %s766_s13, 0 }
   0xb   : > { %p35_p0 = scmp.ge.s32.totalorder %s33_s19, 2  ;;  %p54_p2 = scmp.eq.s32.totalorder %s778_s16, 0 }
   0xc   : > { %p59_p3 = scmp.ne.s32.totalorder %s766_s13, %s762_s12  ;;  %p60_p5 = scmp.eq.s32.totalorder %s502_s17, 0 }
   0xd   : > { %s1056_s19 = smov (%p35_p0, %s33_s19), 0  ;;  %p851_p4 = por %p747_p1, %p54_p2 }
   0xe   : > { %p855_p6 = por %p60_p5, %p59_p3  ;;  %s101_s22 = ssub.s32 %s774_s15, %s1056_s19 }
   0xf   : > { %p102_p7 = scmp.eq.s32.totalorder %s101_s22, 0  ;;  %s104_s23 = sadd.s32 1, %s758_s11 }
  0x10   : > { %p114_p8 = scmp.ne.s32.totalorder %s758_s11, %s754_s10  ;;  %p115_p9 = scmp.eq.s32.totalorder %s502_s17, 1 }
  0x11   : > { %s863_s24 = scalar_select %p102_p7, %s758_s11, %s104_s23  }
  0x12   : > { %p120_p10 = scmp.ne.s32.totalorder %s754_s10, %s750_s9  ;;  %p121_p11 = scmp.eq.s32.totalorder %s503_s18, 1 }
  0x13   : > { %p869_p12 = por %p115_p9, %p114_p8  ;;  %p505_p13 = scmp.ge.s32.totalorder %s778_s16, 2 }
  0x14   : > { %p874_p0 = por %p121_p11, %p120_p10  ;;  %p529_p1 = scmp.lt.s32.totalorder %s778_s16, 2 }
  0x15   : > { %s152_s29 = sshll.u32 %s1038_s0, 4  ;;  %s780_s30 = smov [#allocation2]   ;;  %s153_s29 = int_to_ptr.hbm [resolvable:$true] %s152_s29 }
  0x16   : > { %s154_s3 = sshll.u32 %s780_s30, 4  ;;  %p884_p2 = pnand %p529_p1, %p851_p4  ;;  %s155_s3 = int_to_ptr.vmem [resolvable:$true] %s154_s3 }
  0x17   : > { %p506_p3 = scmp.ge.s32.totalorder %s778_s16, 1  ;;  %p179_p5 = scmp.lt.s32.totalorder %s778_s16, 3 }
  0x18   : > { %s611_s5 = sshra.s32 %s153_s29, 4  ;;  %p615_p8 = pneg %p884_p2  ;;  %s612_s5 = int_to_ptr.hbm [resolvable:$true] %s611_s5 }
  0x19   : > { %s613_s6 = scalar_lea.hbm %s612_s5, 1  ;;  %s618_s12 = scalar_lea.hbm %s1038_s0, 1 }
  0x1a   : > { %p614_p7 = scmp.ne.s32.totalorder %s612_s5, %s613_s6  ;;  %p620_p4 = scmp.lt.s32.totalorder %s618_s12, %s613_s6 }
  0x1c   : > { %p616_p9 = pnand %p615_p8, %p614_p7 }
  0x1e   : > { %p617_p10 = pneg %p616_p9 }
  0x20   : > { %p622_p11 = pnand %p620_p4, %p617_p10 }
  0x22   : > { %625 = shalt.err (!%p622_p11)
}
  0x23   : > { %521 = dma.hbm_to_vmem [thread:$0]  (!%p884_p2), %s153_s29, 16, %s155_s3, [#allocation3]  }
  0x24   : > { %p904_p1 = pnand %p506_p3, %p179_p5  ;;  %s172_s22 = sshll.u32 %s1039_s1, 4  ;;  %s173_s22 = int_to_ptr.hbm [resolvable:$true] %s172_s22 }
  0x25   : > { %s781_s23 = smov [#allocation5]   ;;  %s641_s28 = sshra.s32 %s173_s22, 4  ;;  %s642_s28 = int_to_ptr.hbm [resolvable:$true] %s641_s28 }
  0x26   : > { %s174_s27 = sshll.u32 %s781_s23, 4  ;;  %s643_s30 = scalar_lea.hbm %s642_s28, 1  ;;  %s175_s27 = int_to_ptr.vmem [resolvable:$true] %s174_s27 }
  0x27   : > { %p644_p7 = scmp.ne.s32.totalorder %s642_s28, %s643_s30  ;;  %s648_s5 = scalar_lea.hbm %s1039_s1, 1 }
  0x28   : > { %p650_p3 = scmp.lt.s32.totalorder %s648_s5, %s643_s30 }
  0x29   : > { %p646_p9 = pnand %p644_p7, %p615_p8 }
  0x2b   : > { %p647_p10 = pneg %p646_p9 }
  0x2d   : > { %p652_p5 = pnand %p650_p3, %p647_p10 }
  0x2f   : > { %655 = shalt.err (!%p652_p5)
}
  0x30   : > { %524 = dma.hbm_to_vmem [thread:$0]  (!%p884_p2), %s173_s22, 16, %s175_s27, [#allocation6]  }
  0x31   : > { %183 = sbr.rel (%p904_p1) target bundleno = 165 (0xa5), region = 28  ;;  %s185_s6 = sand.u32 (!%p904_p1), 1, %s766_s13  }
  0x32   : > { %s186_s7 = scalar_lea.sflag (!%p904_p1), [#allocation3], %s185_s6  ;;  %s188_s8 = scalar_lea.vmem (!%p904_p1), [#allocation2], %s185_s6 }
  0x36   : > { %736 = dma.done.wait (%p855_p6), %s186_s7, 16  }
  0x37   : > { %738 = vsyncadd (%p855_p6), %s186_s7, 4294967280  ;;  %s195_s12 = scalar_lea.sflag [#allocation6], %s185_s6  ;;  %s197_s18 = scalar_lea.vmem [#allocation5], %s185_s6 }
  0x38   : > { %740 = dma.done.wait (%p855_p6), %s195_s12, 16  }
  0x39   : > { %742 = vsyncadd (%p855_p6), %s195_s12, 4294967280  ;;  %s219_s4 = sand.u32 1, %s754_s10   ;;  %v782_v0 = vmov 0.0   ;;  %v232_v1 = vld [vmem:[%s188_s8] sm:$0x1]  ;;  %s409_s22 = scalar_lea.hbm %s1040_s2, %s770_s14 }
  0x3a   : > { %s933_s17 = scalar_lea.vmem [#allocation7], %s219_s4  ;;  %v233_v2 = vld [vmem:[%s197_s18] sm:$0x1]  ;;  %v783_v15 = vmov 683565275   ;;  %s413_s27 = sshll.u32 %s409_s22, 4  ;;  %s414_s27 = int_to_ptr.hbm [resolvable:$true] %s413_s27 }
  0x3b   : > { %231 = vst [vmem:[%s933_s17] sm:$0x1] %v782_v0  ;;  %v936_v3 = vsub.f32 %v232_v1, %v233_v2  ;;  %v784_v17 = vmov 2475754826   ;;  %v785_v19 = vmov 2131351028   ;;  %s411_s23 = sshll.u32 %s933_s17, 4  ;;  %s412_s23 = int_to_ptr.vmem [resolvable:$true] %s411_s23 }
  0x3c   : > { %v786_v21 = vmov 2102212464   ;;  %v787_v23 = vmov 920167782   ;;  %v788_v29 = vmov 1326507024  }
  0x3d   : > { %v238_v4 = vand.u32 2139095040, %v936_v3  ;;  %v235_v6 = vand.u32 2147483647, %v936_v3  ;;  %vm237_vm12 = vcmp.lt.s32.totalorder %v936_v3, 0  ;;  %s401_s28 = scalar_lea.sflag [#allocation4], %s219_s4  ;;  %s685_s30 = sshra.s32 %s414_s27, 4  ;;  %s686_s30 = int_to_ptr.hbm [resolvable:$true] %s685_s30 }
  0x3e   : > { %s687_s29 = scalar_lea.hbm %s686_s30, 1  ;;  %s691_s5 = scalar_lea.hbm %s1040_s2, 2 }
  0x3f   : > { %v239_v5 = vshrl.u32 %v238_v4, 23  ;;  %v242_v9 = vand.u32 8388607, %v235_v6  ;;  %v789_v4 = vmov 0   ;;  %vm980_vm13 = vcmp.le.f32.partialorder %v235_v6, 0.7853982  ;;  %p688_p6 = scmp.ne.s32.totalorder %s686_s30, %s687_s29  ;;  %p692_p4 = scmp.lt.s32.totalorder %s686_s30, %s1040_s2 }
  0x40   : > { %p693_p11 = scmp.lt.s32.totalorder %s691_s5, %s687_s29 }
  0x41   : > { %v507_v7 = vadd.s32 4294967169, %v239_v5  ;;  %v243_v12 = vor.u32 8388608, %v242_v9  ;;  %p689_p2 = pnand %p688_p6, %p869_p12 }
  0x42   : > { %p694_p1 = por %p693_p11, %p692_p4 }
  0x43   : > { %v245_v8 = vadd.s32 1, %v507_v7  ;;  %v945_v31 = vshll.u32 %v243_v12, 8  ;;  %p690_p8 = pneg %p689_p2 }
  0x45   : > { %vm246_vm0 = vcmp.gt.s32.totalorder %v245_v8, 0  ;;  %v284_v43 = vand.u32 65535, %v945_v31  ;;  %v285_v44 = vshrl.u32 %v945_v31, 16  ;;  %p695_p7 = pnand %p694_p1, %p690_p8 }
  0x46   : > { %v247_v10 = vsel %vm246_vm0, %v245_v8, 0 }
  0x47   : > { %v249_v11 = vand.u32 31, %v247_v10  ;;  %v942_v13 = vshrl.u32 %v247_v10, 5 }
  0x49   : > { %v250_v14 = vsub.s32 32, %v249_v11  ;;  %v252_v16 = vshll.u32 %v783_v15, %v249_v11  ;;  %v255_v18 = vshll.u32 %v784_v17, %v249_v11  ;;  %v258_v20 = vshll.u32 %v785_v19, %v249_v11 }
  0x4a   : > { %v261_v22 = vshll.u32 %v786_v21, %v249_v11  ;;  %v264_v24 = vshll.u32 %v787_v23, %v249_v11  ;;  %vm267_vm1 = vcmp.lt.s32.totalorder %v942_v13, 1  ;;  %vm270_vm2 = vcmp.lt.s32.totalorder %v942_v13, 4 }
  0x4b   : > { %v253_v25 = vshrl.u32 %v784_v17, %v250_v14  ;;  %v256_v26 = vshrl.u32 %v785_v19, %v250_v14  ;;  %v259_v27 = vshrl.u32 %v786_v21, %v250_v14  ;;  %v262_v28 = vshrl.u32 %v787_v23, %v250_v14 }
  0x4c   : > { %v265_v30 = vshrl.u32 %v788_v29, %v250_v14  ;;  %vm269_vm3 = vcmp.lt.s32.totalorder %v942_v13, 3  ;;  %vm268_vm4 = vcmp.lt.s32.totalorder %v942_v13, 2  ;;  %v251_v51 = vshrl.u32 %v783_v15, %v250_v14 }
  0x4d   : > { %v254_v32 = vor.u32 %v253_v25, %v252_v16  ;;  %v257_v33 = vor.u32 %v256_v26, %v255_v18  ;;  %v260_v34 = vor.u32 %v259_v27, %v258_v20  ;;  %v263_v35 = vor.u32 %v262_v28, %v261_v22 }
  0x4e   : > { %v266_v36 = vor.u32 %v265_v30, %v264_v24 }
  0x4f   : > { %v275_v37 = vsel %vm267_vm1, %v254_v32, %v257_v33  ;;  %v279_v38 = vsel %vm267_vm1, %v257_v33, %v260_v34  ;;  %v276_v39 = vsel %vm270_vm2, %v263_v35, 920167782  ;;  %v271_v0 = vsel %vm267_vm1, %v251_v51, %v254_v32 }
  0x50   : > { %v280_v40 = vsel %vm270_vm2, %v266_v36, 1326507024  ;;  %v277_v41 = vsel %vm269_vm3, %v260_v34, %v276_v39  ;;  %v272_v2 = vsel %vm270_vm2, %v260_v34, 2102212464  ;;  %vm378_vm1 = vweird.f32 %v936_v3 }
  0x51   : > { %v281_v42 = vsel %vm269_vm3, %v263_v35, %v280_v40  ;;  %v278_v45 = vsel %vm268_vm4, %v275_v37, %v277_v41  ;;  %v273_v15 = vsel %vm269_vm3, %v257_v33, %v272_v2  ;;  %v391_v2 = vlaneseq }
  0x52   : > { %v282_v46 = vsel %vm268_vm4, %v279_v38, %v281_v42  ;;  %v308_v49 = vand.u32 65535, %v278_v45  ;;  %v309_v50 = vshrl.u32 %v278_v45, 16  ;;  %v274_v23 = vsel %vm268_vm4, %v271_v0, %v273_v15 }
  0x53   : > { %v286_v47 = vand.u32 65535, %v282_v46  ;;  %v287_v48 = vshrl.u32 %v282_v46, 16  ;;  %v328_v27 = vmul.u32 %v945_v31, %v274_v23 }
  0x54   : > { %v310_v55 = vmul.u32 %v308_v49, %v284_v43  ;;  %v311_v56 = vmul.u32 %v309_v50, %v284_v43  ;;  %v312_v57 = vmul.u32 %v308_v49, %v285_v44  ;;  %v313_v61 = vmul.u32 %v309_v50, %v285_v44 }
  0x55   : > { %v288_v52 = vmul.u32 %v286_v47, %v284_v43  ;;  %v289_v53 = vmul.u32 %v287_v48, %v284_v43  ;;  %v290_v54 = vmul.u32 %v286_v47, %v285_v44  ;;  %v291_v58 = vmul.u32 %v287_v48, %v285_v44 }
  0x56   : > { %v314_v62 = vshll.u32 %v311_v56, 16  ;;  %v316_v63 = vshll.u32 %v312_v57, 16  ;;  %v315_v12 = vshrl.u32 %v311_v56, 16  ;;  %v317_v19 = vshrl.u32 %v312_v57, 16 }
  0x57   : > { %v292_v59 = vshll.u32 %v289_v53, 16  ;;  %v294_v60 = vshll.u32 %v290_v54, 16  ;;  %v293_v8 = vshrl.u32 %v289_v53, 16  ;;  %v295_v16 = vshrl.u32 %v290_v54, 16 }
  0x58   : > { %vm318_vm6 = vc.u32 %v310_v55, %v314_v62  ;;  %v320_v7 = vadd.s32 %v314_v62, %v310_v55 }
  0x59   : > { %vm296_vm5 = vc.u32 %v288_v52, %v292_v59  ;;  %v298_v1 = vadd.s32 %v292_v59, %v288_v52  ;;  %v319_v10 = vsel %vm318_vm6, 1, %v789_v4 }
  0x5a   : > { %v297_v5 = vsel %vm296_vm5, 1, %v789_v4  ;;  %v321_v14 = vadd.s32 %v319_v10, %v313_v61  ;;  %vm322_vm8 = vc.u32 %v320_v7, %v316_v63  ;;  %v324_v22 = vadd.s32 %v320_v7, %v316_v63 }
  0x5b   : > { %v299_v9 = vadd.s32 %v297_v5, %v291_v58  ;;  %vm300_vm7 = vc.u32 %v298_v1, %v294_v60  ;;  %v323_v18 = vsel %vm322_vm8, 1, %v789_v4  ;;  %v392_v10 = vshrl.u32 %v391_v2, 7 }
  0x5c   : > { %v301_v11 = vsel %vm300_vm7, 1, %v789_v4  ;;  %v325_v20 = vadd.s32 %v323_v18, %v321_v14 }
  0x5d   : > { %v303_v17 = vadd.s32 %v301_v11, %v299_v9  ;;  %v393_v11 = vstv %s770_s14 }
  0x5e   : > { %v326_v24 = vadd.s32 %v325_v20, %v315_v12 }
  0x5f   : > { %v304_v21 = vadd.s32 %v303_v17, %v293_v8  ;;  %v394_v17 = vadd.s32 %v393_v11, %v392_v10 }
  0x60   : > { %v327_v26 = vadd.s32 %v326_v24, %v317_v19 }
  0x61   : > { %v305_v25 = vadd.s32 %v304_v21, %v295_v16  ;;  %vm395_vm2 = vcmp.lt.s32.totalorder %v394_v17, 1 }
  0x62   : > { %v331_v28 = vadd.s32 1, %v327_v26 }
  0x63   : > { %vm330_vm9 = vc.u32 %v305_v25, %v324_v22  ;;  %v329_v13 = vadd.s32 %v324_v22, %v305_v25  ;;  %v397_v22 = vld [vmem:[%s933_s17] sm:$0x1] }
  0x64   : > { %v332_v29 = vsel %vm330_vm9, %v331_v28, %v327_v26 }
  0x65   : > { %v333_v30 = vadd.s32 %v332_v29, %v328_v27 }
  0x67   : > { %v334_v32 = vadd.s32 536870912, %v333_v30 }
  0x69   : > { %v335_v33 = vshrl.u32 %v334_v32, 30 }
  0x6b   : > { %v336_v34 = vshll.u32 %v335_v33, 30  ;;  %v359_v54 = vsub.s32 4, %v335_v33 }
  0x6d   : > { %v337_v35 = vsub.s32 %v333_v30, %v336_v34  ;;  %v360_v59 = vsel %vm237_vm12, %v359_v54, %v335_v33 }
  0x6e   : > { %v362_v6 = vsel %vm980_vm13, 0, %v360_v59 }
  0x6f   : > { %vm338_vm10 = vcmp.lt.s32.totalorder %v337_v35, 0  ;;  %v339_v36 = vsub.s32 0, %v337_v35  ;;  %v379_v4 = vand.u32 3, %v362_v6 }
  0x71   : > { %v340_v37 = vsel %vm338_vm10, %v339_v36, %v337_v35  ;;  %vm384_vm14 = vcmp.eq.s32.totalorder %v379_v4, 2  ;;  %vm381_vm15 = vcmp.eq.s32.totalorder %v379_v4, 0  ;;  %vm380_vm0 = vcmp.lt.s32.totalorder %v379_v4, 2 }
  0x72   : > { %v341_v38 = vclz %v340_v37 }
  0x74   : > { %v508_v39 = vadd.s32 4294967294, %v341_v38 }
  0x76   : > { %vm509_vm11 = vcmp.lt.s32.totalorder %v508_v39, 0 }
  0x77   : > { %v344_v40 = vsel %vm509_vm11, 0, %v508_v39 }
  0x78   : > { %v345_v41 = vsub.s32 32, %v344_v40  ;;  %v346_v42 = vshll.u32 %v337_v35, %v344_v40  ;;  %v349_v43 = vsub.s32 4294967266, %v344_v40 }
  0x7a   : > { %v347_v31 = vshrl.u32 %v329_v13, %v345_v41  ;;  %v350_v44 = vadd.s32 127, %v349_v43 }
  0x7c   : > { %v348_v45 = vor.u32 %v347_v31, %v346_v42  ;;  %v351_v46 = vshll.u32 %v350_v44, 23 }
  0x7e   : > { %v352_v47 = vor.u32 4788187, %v351_v46  ;;  %v355_v48 = vcvt.s32.f32 %v348_v45 }
  0x80   : > { %v353_v49 = vand.u32 2147483647, %v352_v47 }
  0x82   : > { %v356_v50 = vmul.f32 %v355_v48, %v353_v49 }
  0x84   : > { %v357_v52 = vxor.u32 2147483648, %v356_v50 }
  0x86   : > { %v358_v53 = vsel %vm237_vm12, %v357_v52, %v356_v50 }
  0x87   : > { %v361_v55 = vsel %vm980_vm13, %v936_v3, %v358_v53 }
  0x88   : > { %v363_v56 = vmul.f32 %v361_v55, %v361_v55 }
  0x8a   : > { %v364_v57 = vmul.f32 -0.001358992, %v363_v56  ;;  %v371_v58 = vmul.f32 -0.00019511016, %v363_v56 }
  0x8c   : > { %v365_v60 = vadd.f32 0.041655596, %v364_v57  ;;  %v372_v61 = vadd.f32 0.008332121, %v371_v58 }
  0x8e   : > { %v366_v62 = vmul.f32 %v365_v60, %v363_v56  ;;  %v373_v63 = vmul.f32 %v372_v61, %v363_v56 }
  0x90   : > { %v367_v0 = vadd.f32 -0.4999988, %v366_v62  ;;  %v374_v1 = vadd.f32 -0.16666654, %v373_v63 }
  0x92   : > { %v368_v5 = vmul.f32 %v367_v0, %v363_v56  ;;  %v375_v7 = vmul.f32 %v374_v1, %v363_v56 }
  0x94   : > { %v369_v8 = vadd.f32 1.0, %v368_v5  ;;  %v376_v9 = vadd.f32 1.0, %v375_v7 }
  0x96   : > { %v377_v12 = vmul.f32 %v376_v9, %v361_v55  ;;  %v385_v14 = vxor.u32 2147483648, %v369_v8 }
  0x98   : > { %v382_v15 = vxor.u32 2147483648, %v377_v12  ;;  %v386_v16 = vsel %vm384_vm14, %v385_v14, %v377_v12 }
  0x9a   : > { %v383_v18 = vsel %vm381_vm15, %v369_v8, %v382_v15 }
  0x9b   : > { %v387_v19 = vsel %vm380_vm0, %v383_v18, %v386_v16 }
  0x9c   : > { %v388_v20 = vsel %vm378_vm1, nan, %v387_v19 }
  0x9d   : > { %v389_v21 = vsub.f32 1.0, %v388_v20 }
  0x9f   : > { %v396_v23 = vsel %vm395_vm2, %v389_v21, 0.0 }
  0xa0   : > { %v398_v24 = vadd.f32 %v397_v22, %v396_v23 }
  0xa2   : > { %399 = vst [vmem:[%s933_s17] sm:$0x1] %v398_v24 }
  0xa3   : > { %698 = shalt.err (!%p695_p7)
}
  0xa4   : > { %516 = dma.vmem_to_hbm [thread:$0]  (%p869_p12), %s412_s23, 16, %s414_s27, %s401_s28  }
  0xa5 PF: > { %s425_s8 = sand.u32 1, %s750_s9   ;;  %p526_p9 = pnand %p505_p13, %p874_p0 }
  0xa6   : > { %s426_s12 = scalar_lea.sflag [#allocation4], %s425_s8 }
  0xa7   : > { %p527_p10 = pneg %p526_p9 }
  0xa9   : > { %744 = dma.done.wait (%p527_p10), %s426_s12, 16  }
  0xaa   : > { %746 = vsyncadd (%p527_p10), %s426_s12, 4294967280  ;;  %s21_s16 = sadd.s32 1, %s778_s16   ;;  %s1049_s9 = smov %s754_s10 }
  0xab   : > { %p18_p3 = scmp.ge.s32.totalorder %s21_s16, 4   ;;  %s1050_s10 = smov %s758_s11 }
  0xac   : > { %s1051_s11 = smov %s863_s24  ;;  %s1052_s12 = smov %s766_s13 }
  0xad   : > { %s1028_s13 = smov 0   ;;  %s1053_s14 = smov %s774_s15 }
  0xae   : > { %s1054_s15 = smov %s1056_s19  ;;  %20 = sbr.rel (!%p18_p3) target bundleno = 9 (0x9), region = 90 }
  0xb3   :  { %431 = vsyncpa [#allocation3], 1 }
  0xb4   :  { %433 = vsyncpa [#allocation3 + $0x1], 1 }
  0xb5   :  { %434 = vsyncpa [#allocation6], 1 }
  0xb6   :  { %436 = vsyncpa [#allocation6 + $0x1], 1 }
  0xb7   :  { %437 = vsyncpa [#allocation4], 1 }
  0xb8   :  { %439 = vsyncpa [#allocation4 + $0x1], 1 }

</bundles_post_ra>
